<compile_context>
chip_gen: v6e
topology: v6e:2x2x1
jax: 0.10.0
libtpu: 0.0.40
codegen_flags: <defaults>
</compile_context>

<pallas_src>
import functools

import jax
import jax.numpy as jnp
from jax.experimental import pallas as pl
from jax.experimental.pallas import tpu as pltpu


def _round_up(x, m):
    return (x + m - 1) // m * m


def _num_tensorcores():
    """Best-effort TensorCores-per-chip (2 on v7x, 1 on v5e/v6e).

    Used only to size the grid so dimension_semantics=('parallel',) splits
    evenly across cores; falls back to 1 (single grid step) if unknown."""
    try:
        info = pltpu.get_tpu_info()
        for name in ("num_cores", "num_tensorcores", "tensorcores_per_chip",
                     "cores_per_chip", "core_count"):
            n = getattr(info, name, None)
            if n:
                return max(1, min(2, int(n)))
    except Exception:
        pass
    try:
        n = getattr(jax.devices()[0], "num_cores", None)
        if n:
            return max(1, min(2, int(n)))
    except Exception:
        pass
    return 1


def _pick_batch_tile(B, align, num_tcs, row_bytes):
    """One grid step per TensorCore (per-step overhead ~0.35us dominates this
    tiny kernel); only split further if a single x tile would exceed ~8 MiB."""
    max_rows = max(align, ((8 << 20) // max(1, row_bytes)) // align * align)
    steps = max(1, num_tcs)
    while (B // steps > max_rows and B % (2 * steps) == 0
           and (B // (2 * steps)) % align == 0):
        steps *= 2
    if steps > 1 and B % steps == 0 and (B // steps) % align == 0:
        return B // steps
    return B  # single full-batch step


def _doublev_fused_kernel(x_ref, mats_ref, vecs_ref, out_ref, *, Dp, HP):
    """Computes min(MLP_1(x), MLP_2(x)) for one batch tile, both critics fused."""
    x = x_ref[...]

    w1 = mats_ref[0:Dp, :]           # (Dp, HP) = [w1a | w1b | 0]   (sublane-aligned slice)
    w2 = mats_ref[Dp:Dp + HP, :]     # (HP, HP) = blockdiag(w2a, w2b), zero-padded
    b1 = vecs_ref[0:1, :]            # fused layer-1 bias row (f32)
    b2 = vecs_ref[1:2, :]            # fused layer-2 bias row; lane HP-1 == 1.0
    w3a = vecs_ref[2:3, :]           # head-a row: weights in [0,H2), b3a in lane HP-1
    w3b = vecs_ref[3:4, :]           # head-b row: weights in [H2,2*H2), b3b in lane HP-1

    h = jnp.dot(x, w1, preferred_element_type=jnp.float32) + b1
    h = jnp.maximum(h, 0.0)                      # ReLU (VPU)
    h = h.astype(w1.dtype)                       # MXU-native dtype (no-op for f32)
    h = jnp.dot(h, w2, preferred_element_type=jnp.float32) + b2
    h = jnp.maximum(h, 0.0)                      # ReLU; h[:, HP-1] == 1 (bias lane)

    # N=1 heads: VPU multiply + XLU lane reduce; head biases ride on lane HP-1.
    v1 = jnp.sum(h * w3a, axis=-1, keepdims=True)
    v2 = jnp.sum(h * w3b, axis=-1, keepdims=True)

    # TODO(synk): a lane-dense (1, tb) store (batch on lanes) would avoid the
    # masked vst of this 1-lane column; minor at these sizes (output is B*4 B).
    out_ref[...] = jnp.minimum(v1, v2).astype(out_ref.dtype)


def pack_params(params, obs_dim, hidden_dim, dtype=jnp.float32):
    """Fuse + zero-pad both critics' weights into two lane-dense operands.

    Returns (mats, vecs, Dp, HP).  `mats` carries [W1 ; W2] in `dtype`;
    `vecs` (always f32, tiny) carries bias rows + head rows with the head
    biases folded into spare lane HP-1 (bias-in-lane trick)."""
    H1, H2 = hidden_dim
    D = obs_dim
    align = 16 if dtype == jnp.bfloat16 else 8   # packed (16,128) tile for bf16
    Dp = _round_up(D, align)                     # aligned W2 row offset / x width
    # Fused hidden, 128-lane aligned, with >=1 spare lane above 2*H2 for the
    # bias-in-lane trick.
    HP = _round_up(max(2 * H1, 2 * H2 + 1, 128), 128)

    mats = jnp.zeros((Dp + HP, HP), jnp.float32)
    mats = mats.at[0:D, 0:H1].set(params["w1a"])
    mats = mats.at[0:D, H1:2 * H1].set(params["w1b"])
    mats = mats.at[Dp:Dp + H1, 0:H2].set(params["w2a"])
    mats = mats.at[Dp + H1:Dp + 2 * H1, H2:2 * H2].set(params["w2b"])

    vecs = jnp.zeros((8, HP), jnp.float32)
    vecs = vecs.at[0, 0:H1].set(params["b1a"][0])
    vecs = vecs.at[0, H1:2 * H1].set(params["b1b"][0])
    vecs = vecs.at[1, 0:H2].set(params["b2a"][0])
    vecs = vecs.at[1, H2:2 * H2].set(params["b2b"][0])
    vecs = vecs.at[1, HP - 1].set(1.0)                   # h[:, HP-1] == 1 after ReLU
    vecs = vecs.at[2, 0:H2].set(params["w3a"][:, 0])
    vecs = vecs.at[2, HP - 1].set(params["b3a"][0, 0])   # head-a bias in spare lane
    vecs = vecs.at[3, H2:2 * H2].set(params["w3b"][:, 0])
    vecs = vecs.at[3, HP - 1].set(params["b3b"][0, 0])   # head-b bias in spare lane
    return mats.astype(dtype), vecs, Dp, HP


def double_v_critic_forward(x, params, hidden_dim, *, batch_tile=None,
                            use_bf16=False):
    """x: (B, D) float32. params: dict of per-critic weights (see init_params).

    use_bf16=True halves the x / weight HBM bytes (recommended on v6e/v7x);
    it is an opt-in numerics change vs. the f32 PyTorch reference."""
    B, D = x.shape
    compute_dtype = jnp.bfloat16 if use_bf16 else jnp.float32
    align = 16 if use_bf16 else 8
    mats, vecs, Dp, HP = pack_params(params, D, hidden_dim, dtype=compute_dtype)

    # Zero-pad x columns to the aligned Dp so both the x block and the W1
    # slice stay tile-aligned for any OneHotFlatten width (zeros are inert).
    x = x.astype(compute_dtype)
    if Dp != D:
        x = jnp.pad(x, ((0, 0), (0, Dp - D)))

    if batch_tile is None:
        row_bytes = Dp * (2 if use_bf16 else 4)
        tb = _pick_batch_tile(B, align, _num_tensorcores(), row_bytes)
    else:
        tb = batch_tile
    assert B % tb == 0, "batch must be divisible by the batch tile"
    assert tb == B or tb % align == 0, "batch tile must respect dtype tile alignment"

    grid = (B // tb,)
    kernel = functools.partial(_doublev_fused_kernel, Dp=Dp, HP=HP)

    # TODO(synk): for very large hidden widths on v7x (64 MiB VMEM) the
    # resident-weights design should fall back to bf16 weights and/or an HP
    # chunking grid axis with a VMEM accumulator, keyed off
    # pltpu.get_tpu_info().vmem_capacity_bytes.
    return pl.pallas_call(
        kernel,
        out_shape=jax.ShapeDtypeStruct((B, 1), jnp.float32),
        grid_spec=pltpu.PrefetchScalarGridSpec(
            num_scalar_prefetch=0,
            grid=grid,
            in_specs=[
                # x tile: the only B-scaled stream (double-buffered by default).
                pl.BlockSpec((tb, Dp), lambda i: (i, 0)),
                # Resident packed W1;W2 — constant index_map, single-buffered.
                pl.BlockSpec(mats.shape, lambda i: (0, 0),
                             pipeline_mode=pl.Buffered(1)),
                # Resident bias/head rows (f32, tiny) — single-buffered.
                pl.BlockSpec(vecs.shape, lambda i: (0, 0),
                             pipeline_mode=pl.Buffered(1)),
            ],
            out_specs=pl.BlockSpec((tb, 1), lambda i: (i, 0)),
        ),
        compiler_params=pltpu.CompilerParams(
            dimension_semantics=("parallel",),        # 2-way split on v7x megacore
            vmem_limit_bytes=32 * 1024 * 1024,
        ),
    )(x, mats, vecs)


def init_params(key, obs_dim, hidden_dim):
    """Deterministic PyTorch-Linear-style init (uniform +-1/sqrt(fan_in)).
    Weights stored transposed as (in, out); biases as (1, out)."""
    assert len(hidden_dim) == 2, "script instantiates a 2-hidden-layer MLP"
    dims = [obs_dim] + list(hidden_dim) + [1]
    params = {}
    for net in ("a", "b"):
        for li, (din, dout) in enumerate(zip(dims[:-1], dims[1:]), start=1):
            key, kw, kb = jax.random.split(key, 3)
            bound = 1.0 / jnp.sqrt(jnp.float32(din))
            params[f"w{li}{net}"] = jax.random.uniform(
                kw, (din, dout), jnp.float32, -bound, bound)
            params[f"b{li}{net}"] = jax.random.uniform(
                kb, (1, dout), jnp.float32, -bound, bound)
    return params


def reference_forward(x, p):
    def mlp(net):
        h = jnp.maximum(x @ p[f"w1{net}"] + p[f"b1{net}"], 0.0)
        h = jnp.maximum(h @ p[f"w2{net}"] + p[f"b2{net}"], 0.0)
        return h @ p[f"w3{net}"] + p[f"b3{net}"]
    return jnp.minimum(mlp("a"), mlp("b"))


if __name__ == "__main__":
    key = jax.random.PRNGKey(0)
    B, OBS_DIM = 256, 16
    HIDDEN = [32, 32]

    kx, kp = jax.random.split(key)
    # TODO(synk): OneHotFlatten of a structured obs Space is host-side
    # preprocessing; the kernel consumes the already-flattened float vector.
    x = jax.random.normal(kx, (B, OBS_DIM), jnp.float32)
    params = init_params(kp, OBS_DIM, HIDDEN)

    ref = reference_forward(x, params)

    # f32 path (matches the PyTorch module's numerics); grid = 1 step per TC.
    out = double_v_critic_forward(x, params, HIDDEN)
    jax.block_until_ready(out)
    assert out.shape == (B, 1)
    assert jnp.allclose(out, ref, atol=1e-4, rtol=1e-4), (
        float(jnp.max(jnp.abs(out - ref))))

    # Opt-in bf16 path (halves x/weight HBM bytes on v6e/v7x); looser tolerance
    # because the compute dtype differs from the f32 reference.
    out_bf16 = double_v_critic_forward(x, params, HIDDEN, use_bf16=True)
    jax.block_until_ready(out_bf16)
    assert out_bf16.shape == (B, 1)
    assert jnp.allclose(out_bf16, ref, atol=5e-2, rtol=5e-2), (
        float(jnp.max(jnp.abs(out_bf16 - ref))))

    print("KERNEL_OK")
</pallas_src>

<mosaic_0001>
module attributes {stable_mosaic.version = 11 : i64} {
  func.func @_doublev_fused_kernel(%arg0: i32, %arg1: memref<256x16xf32, #tpu.memory_space<vmem>>, %arg2: memref<144x128xf32, #tpu.memory_space<vmem>>, %arg3: memref<8x128xf32, #tpu.memory_space<vmem>>, %arg4: memref<256x1xf32, #tpu.memory_space<vmem>>) attributes {dimension_semantics = [#tpu.dimension_semantics<parallel>], iteration_bounds = array<i64: 1>, scalar_prefetch = 0 : i64, scratch_operands = 0 : i64, tpu.core_type = #tpu.core_type<tc>, window_params = [{transform_indices = @transform_0, window_bounds = array<i64: 256, 16>}, {pipeline_mode = #tpu.pipeline_mode<synchronous>, transform_indices = @transform_1, window_bounds = array<i64: 144, 128>}, {pipeline_mode = #tpu.pipeline_mode<synchronous>, transform_indices = @transform_2, window_bounds = array<i64: 8, 128>}, {transform_indices = @transform_3, window_bounds = array<i64: 256, 1>}]} {
    %c0 = arith.constant 0 : index
    %c0_0 = arith.constant 0 : index
    %0 = vector.load %arg1[%c0, %c0_0] : memref<256x16xf32, #tpu.memory_space<vmem>>, vector<256x16xf32>
    %c0_1 = arith.constant 0 : index
    %c0_2 = arith.constant 0 : index
    %1 = vector.load %arg2[%c0_1, %c0_2] : memref<144x128xf32, #tpu.memory_space<vmem>>, vector<16x128xf32>
    %c16 = arith.constant 16 : index
    %c0_3 = arith.constant 0 : index
    %2 = vector.load %arg2[%c16, %c0_3] : memref<144x128xf32, #tpu.memory_space<vmem>>, vector<128x128xf32>
    %c0_4 = arith.constant 0 : index
    %c0_5 = arith.constant 0 : index
    %3 = vector.load %arg3[%c0_4, %c0_5] : memref<8x128xf32, #tpu.memory_space<vmem>>, vector<1x128xf32>
    %c1 = arith.constant 1 : index
    %c0_6 = arith.constant 0 : index
    %4 = vector.load %arg3[%c1, %c0_6] : memref<8x128xf32, #tpu.memory_space<vmem>>, vector<1x128xf32>
    %c2 = arith.constant 2 : index
    %c0_7 = arith.constant 0 : index
    %5 = vector.load %arg3[%c2, %c0_7] : memref<8x128xf32, #tpu.memory_space<vmem>>, vector<1x128xf32>
    %c3 = arith.constant 3 : index
    %c0_8 = arith.constant 0 : index
    %6 = vector.load %arg3[%c3, %c0_8] : memref<8x128xf32, #tpu.memory_space<vmem>>, vector<1x128xf32>
    %cst = arith.constant dense<0.000000e+00> : vector<256x128xf32>
    %7 = tpu.matmul %0, %1, %cst {dimension_numbers = #tpu.dot_dimension_numbers<[1], [0], [0], [1], [0, 0, 1, 1], [], []>} : vector<256x16xf32>, vector<16x128xf32>, vector<256x128xf32> -> vector<256x128xf32>
    %8 = vector.broadcast %3 : vector<1x128xf32> to vector<256x128xf32>
    %9 = arith.addf %7, %8 : vector<256x128xf32>
    %cst_9 = arith.constant 0.000000e+00 : f32
    %10 = vector.broadcast %cst_9 : f32 to vector<256x128xf32>
    %11 = arith.maximumf %9, %10 : vector<256x128xf32>
    %cst_10 = arith.constant dense<0.000000e+00> : vector<256x128xf32>
    %12 = tpu.matmul %11, %2, %cst_10 {dimension_numbers = #tpu.dot_dimension_numbers<[1], [0], [0], [1], [0, 0, 1, 1], [], []>} : vector<256x128xf32>, vector<128x128xf32>, vector<256x128xf32> -> vector<256x128xf32>
    %13 = vector.broadcast %4 : vector<1x128xf32> to vector<256x128xf32>
    %14 = arith.addf %12, %13 : vector<256x128xf32>
    %cst_11 = arith.constant 0.000000e+00 : f32
    %15 = vector.broadcast %cst_11 : f32 to vector<256x128xf32>
    %16 = arith.maximumf %14, %15 : vector<256x128xf32>
    %17 = vector.broadcast %5 : vector<1x128xf32> to vector<256x128xf32>
    %18 = arith.mulf %16, %17 : vector<256x128xf32>
    %cst_12 = arith.constant dense<0.000000e+00> : vector<256xf32>
    %19 = vector.multi_reduction <add>, %18, %cst_12 [1] : vector<256x128xf32> to vector<256xf32>
    %20 = vector.shape_cast %19 : vector<256xf32> to vector<256x1xf32>
    %21 = vector.broadcast %6 : vector<1x128xf32> to vector<256x128xf32>
    %22 = arith.mulf %16, %21 : vector<256x128xf32>
    %cst_13 = arith.constant dense<0.000000e+00> : vector<256xf32>
    %23 = vector.multi_reduction <add>, %22, %cst_13 [1] : vector<256x128xf32> to vector<256xf32>
    %24 = vector.shape_cast %23 : vector<256xf32> to vector<256x1xf32>
    %25 = arith.minimumf %20, %24 : vector<256x1xf32>
    %c0_14 = arith.constant 0 : index
    %c0_15 = arith.constant 0 : index
    %26 = vector.load %arg4[%c0_14, %c0_15] : memref<256x1xf32, #tpu.memory_space<vmem>>, vector<256x1xf32>
    tpu.vector_store %arg4[%c0_14, %c0_15], %25 {strides = array<i32>} : memref<256x1xf32, #tpu.memory_space<vmem>>, vector<256x1xf32>,
    return
  }
  func.func @transform_0(%arg0: i32) -> (i32, i32) {
    %c0_i32 = arith.constant 0 : i32
    %c0_i32_0 = arith.constant 0 : i32
    return %arg0, %c0_i32 : i32, i32
  }
  func.func @transform_1(%arg0: i32) -> (i32, i32) {
    %c0_i32 = arith.constant 0 : i32
    %c0_i32_0 = arith.constant 0 : i32
    %c0_i32_1 = arith.constant 0 : i32
    return %c0_i32, %c0_i32_0 : i32, i32
  }
  func.func @transform_2(%arg0: i32) -> (i32, i32) {
    %c0_i32 = arith.constant 0 : i32
    %c0_i32_0 = arith.constant 0 : i32
    %c0_i32_1 = arith.constant 0 : i32
    return %c0_i32, %c0_i32_0 : i32, i32
  }
  func.func @transform_3(%arg0: i32) -> (i32, i32) {
    %c0_i32 = arith.constant 0 : i32
    %c0_i32_0 = arith.constant 0 : i32
    return %arg0, %c0_i32 : i32, i32
  }
}

</mosaic_0001>

<bundles_post_ra>
// kernel: tpu_custom_call.1
= control target key start
LH: loop header
LB: loop body
LE: loop exit
PB: predicated region body
PF: predicated region fallthrough
CT: control target
= control target key end

     0   :  { %vm72_vm0 = vcmask 130048   ;;  %vm919_vm1 = vcmask 7168   ;;  %s1776_s1 = inlined_call_operand.vmem [shape: f32[144,128], index: 1, kind: input, shape index: {}]   ;;  %s1777_s0 = inlined_call_operand.vmem [shape: f32[256,16], index: 0, kind: input, shape index: {}]   ;;  %s1778_s2 = inlined_call_operand.vmem [shape: f32[8,128], index: 2, kind: input, shape index: {}]   ;;  %s1779_s3 = inlined_call_operand.vmem [shape: f32[256,1], index: 3, kind: output, shape index: {}]  }
   0x1   :  { %v47_v0 = vld [vmem:[%s1776_s1 + $0x8] sm:$0xff]  ;;  %v46_v1 = vld [vmem:[%s1776_s1] sm:$0xff]  ;;  %v16_v4 = vld [vmem:[%s1777_s0 + $0x10] sm:$0xff] }
   0x2   :  { %v14_v2 = vld [vmem:[%s1777_s0] sm:$0xff]  ;;  %1074 = vmatprep.subr.mxu0 %v47_v0  ;;  %v15_v3 = vld [vmem:[%s1777_s0 + $0x8] sm:$0xff]  ;;  %v17_v5 = vld [vmem:[%s1777_s0 + $0x18] sm:$0xff] }
   0x3   :  { %1078 = vmatprep.mubr.msk.f32.mxu0 %vm72_vm0, %v14_v2  ;;  %1075 = vmatpush3.msra.mxu0 %v47_v0  ;;  %v18_v6 = vld [vmem:[%s1777_s0 + $0x20] sm:$0xff]  ;;  %v19_v7 = vld [vmem:[%s1777_s0 + $0x28] sm:$0xff]  ;;  %v20_v8 = vld [vmem:[%s1777_s0 + $0x30] sm:$0xff] }
   0x4   :  { %1076 = vmatprep.subr.mxu0 %v46_v1  ;;  %v63_v9 = vld [vmem:[%s1776_s1 + $0x88] sm:$0xff]  ;;  %v62_v10 = vld [vmem:[%s1776_s1 + $0x80] sm:$0xff]  ;;  %v21_v11 = vld [vmem:[%s1777_s0 + $0x38] sm:$0xff] }
   0x5   :  { %1077 = vmatpush3.msra.mxu0 %v46_v1  ;;  %1206 = vmatprep.subr.mxu1 %v63_v9  ;;  %v61_v12 = vld [vmem:[%s1776_s1 + $0x78] sm:$0xff]  ;;  %v22_v13 = vld [vmem:[%s1777_s0 + $0x40] sm:$0xff]  ;;  %v60_v14 = vld [vmem:[%s1776_s1 + $0x70] sm:$0xff] }
   0x6   :  { %1079 = vmatmul.mubr.msk.f32.vlgmr.msra.gmra.mxu0 %vm72_vm0, %v15_v3  ;;  %1126 = vmatprep.subr.mxu0 %v63_v9  ;;  %v23_v15 = vld [vmem:[%s1777_s0 + $0x48] sm:$0xff]  ;;  %v24_v17 = vld [vmem:[%s1777_s0 + $0x50] sm:$0xff]  ;;  %v58_v18 = vld [vmem:[%s1776_s1 + $0x60] sm:$0xff] }
   0x7   :  { %1081 = vmatprep.mubr.msk.f32.mxu0 %vm72_vm0, %v16_v4  ;;  %1222 = vmatpush3.msra.mxu1 %v63_v9  ;;  %v59_v16 = vld [vmem:[%s1776_s1 + $0x68] sm:$0xff]  ;;  %v25_v19 = vld [vmem:[%s1777_s0 + $0x58] sm:$0xff]  ;;  %v26_v21 = vld [vmem:[%s1777_s0 + $0x60] sm:$0xff] }
   0x8   :  { %1127 = vmatpush3.msra.mxu0 %v63_v9  ;;  %1207 = vmatprep.subr.mxu1 %v62_v10  ;;  %v57_v20 = vld [vmem:[%s1776_s1 + $0x58] sm:$0xff]  ;;  %v56_v22 = vld [vmem:[%s1776_s1 + $0x50] sm:$0xff]  ;;  %v27_v23 = vld [vmem:[%s1777_s0 + $0x68] sm:$0xff] }
   0x9   :  { %1128 = vmatprep.subr.mxu0 %v62_v10  ;;  %1223 = vmatpush3.msra.mxu1 %v62_v10  ;;  %v55_v24 = vld [vmem:[%s1776_s1 + $0x48] sm:$0xff]  ;;  %v28_v25 = vld [vmem:[%s1777_s0 + $0x70] sm:$0xff]  ;;  %v54_v26 = vld [vmem:[%s1776_s1 + $0x40] sm:$0xff] }
   0xa   :  { %1082 = vmatmul.mubr.msk.f32.gmra.mxu0 %vm72_vm0, %v17_v5  ;;  %1208 = vmatprep.subr.mxu1 %v61_v12  ;;  %v29_v27 = vld [vmem:[%s1777_s0 + $0x78] sm:$0xff]  ;;  %v30_v29 = vld [vmem:[%s1777_s0 + $0x80] sm:$0xff]  ;;  %v52_v30 = vld [vmem:[%s1776_s1 + $0x30] sm:$0xff] }
   0xb   :  { %1084 = vmatprep.mubr.msk.f32.mxu0 %vm72_vm0, %v18_v6  ;;  %1129 = vmatpush3.msra.mxu0 %v62_v10  ;;  %v53_v28 = vld [vmem:[%s1776_s1 + $0x38] sm:$0xff]  ;;  %v31_v31 = vld [vmem:[%s1777_s0 + $0x88] sm:$0xff]  ;;  %v32_v33 = vld [vmem:[%s1777_s0 + $0x90] sm:$0xff] }
   0xc   :  { %1130 = vmatprep.subr.mxu0 %v61_v12  ;;  %1224 = vmatpush3.msra.mxu1 %v61_v12  ;;  %v51_v32 = vld [vmem:[%s1776_s1 + $0x28] sm:$0xff]  ;;  %v50_v34 = vld [vmem:[%s1776_s1 + $0x20] sm:$0xff]  ;;  %v33_v35 = vld [vmem:[%s1777_s0 + $0x98] sm:$0xff] }
   0xd   :  { %1131 = vmatpush3.msra.mxu0 %v61_v12  ;;  %1209 = vmatprep.subr.mxu1 %v60_v14  ;;  %v49_v36 = vld [vmem:[%s1776_s1 + $0x18] sm:$0xff]  ;;  %v34_v37 = vld [vmem:[%s1777_s0 + $0xa0] sm:$0xff]  ;;  %v35_v38 = vld [vmem:[%s1777_s0 + $0xa8] sm:$0xff] }
   0xe   :  { %1085 = vmatmul.mubr.msk.f32.gmra.mxu0 %vm72_vm0, %v19_v7  ;;  %1132 = vmatprep.subr.mxu0 %v60_v14  ;;  %v36_v39 = vld [vmem:[%s1777_s0 + $0xb0] sm:$0xff]  ;;  %v37_v40 = vld [vmem:[%s1777_s0 + $0xb8] sm:$0xff]  ;;  %v38_v41 = vld [vmem:[%s1777_s0 + $0xc0] sm:$0xff] }
   0xf   :  { %1087 = vmatprep.mubr.msk.f32.mxu0 %vm72_vm0, %v20_v8  ;;  %1133 = vmatpush3.msra.mxu0 %v60_v14  ;;  %v39_v42 = vld [vmem:[%s1777_s0 + $0xc8] sm:$0xff]  ;;  %v40_v43 = vld [vmem:[%s1777_s0 + $0xd0] sm:$0xff]  ;;  %v41_v44 = vld [vmem:[%s1777_s0 + $0xd8] sm:$0xff] }
  0x10   :  { %1134 = vmatprep.subr.mxu0 %v59_v16  ;;  %1225 = vmatpush3.msra.mxu1 %v60_v14  ;;  %v42_v45 = vld [vmem:[%s1777_s0 + $0xe0] sm:$0xff]  ;;  %v43_v46 = vld [vmem:[%s1777_s0 + $0xe8] sm:$0xff]  ;;  %v44_v47 = vld [vmem:[%s1777_s0 + $0xf0] sm:$0xff] }
  0x11   :  { %1135 = vmatpush3.msra.mxu0 %v59_v16  ;;  %1210 = vmatprep.subr.mxu1 %v59_v16  ;;  %v45_v48 = vld [vmem:[%s1777_s0 + $0xf8] sm:$0xff]  ;;  %v48_v49 = vld [vmem:[%s1776_s1 + $0x10] sm:$0xff]  ;;  %v1443_v50 = vld [vmem:[%s1778_s2] ss:$0 sm:$0xff] }
  0x12   :  { %1088 = vmatmul.mubr.msk.f32.gmra.mxu0 %vm72_vm0, %v21_v11  ;;  %1136 = vmatprep.subr.mxu0 %v58_v18 }
  0x13   :  { %1090 = vmatprep.mubr.msk.f32.mxu0 %vm72_vm0, %v22_v13  ;;  %1137 = vmatpush3.msra.mxu0 %v58_v18 }
  0x14   :  { %1138 = vmatprep.subr.mxu0 %v57_v20  ;;  %1226 = vmatpush3.msra.mxu1 %v59_v16 }
  0x15   :  { %1139 = vmatpush3.msra.mxu0 %v57_v20  ;;  %1211 = vmatprep.subr.mxu1 %v58_v18 }
  0x16   :  { %1091 = vmatmul.mubr.msk.f32.gmra.mxu0 %vm72_vm0, %v23_v15  ;;  %1140 = vmatprep.subr.mxu0 %v56_v22 }
  0x17   :  { %1093 = vmatprep.mubr.msk.f32.mxu0 %vm72_vm0, %v24_v17  ;;  %1141 = vmatpush3.msra.mxu0 %v56_v22 }
  0x18   :  { %1142 = vmatprep.subr.mxu0 %v55_v24  ;;  %1227 = vmatpush3.msra.mxu1 %v58_v18 }
  0x19   :  { %1143 = vmatpush3.msra.mxu0 %v55_v24  ;;  %1212 = vmatprep.subr.mxu1 %v57_v20 }
  0x1a   :  { %1094 = vmatmul.mubr.msk.f32.gmra.mxu0 %vm72_vm0, %v25_v19  ;;  %1144 = vmatprep.subr.mxu0 %v54_v26 }
  0x1b   :  { %1096 = vmatprep.mubr.msk.f32.mxu0 %vm72_vm0, %v26_v21  ;;  %1145 = vmatpush3.msra.mxu0 %v54_v26 }
  0x1c   :  { %1146 = vmatprep.subr.mxu0 %v53_v28  ;;  %1228 = vmatpush3.msra.mxu1 %v57_v20 }
  0x1d   :  { %1147 = vmatpush3.msra.mxu0 %v53_v28  ;;  %1213 = vmatprep.subr.mxu1 %v56_v22 }
  0x1e   :  { %1097 = vmatmul.mubr.msk.f32.gmra.mxu0 %vm72_vm0, %v27_v23  ;;  %1148 = vmatprep.subr.mxu0 %v52_v30 }
  0x1f   :  { %1099 = vmatprep.mubr.msk.f32.mxu0 %vm72_vm0, %v28_v25  ;;  %1149 = vmatpush3.msra.mxu0 %v52_v30 }
  0x20   :  { %1150 = vmatprep.subr.mxu0 %v51_v32  ;;  %1229 = vmatpush3.msra.mxu1 %v56_v22 }
  0x21   :  { %1151 = vmatpush3.msra.mxu0 %v51_v32  ;;  %1214 = vmatprep.subr.mxu1 %v55_v24 }
  0x22   :  { %1100 = vmatmul.mubr.msk.f32.gmra.mxu0 %vm72_vm0, %v29_v27  ;;  %1152 = vmatprep.subr.mxu0 %v50_v34 }
  0x23   :  { %1102 = vmatprep.mubr.msk.f32.mxu0 %vm72_vm0, %v30_v29  ;;  %1153 = vmatpush3.msra.mxu0 %v50_v34 }
  0x24   :  { %1154 = vmatprep.subr.mxu0 %v49_v36  ;;  %1230 = vmatpush3.msra.mxu1 %v55_v24 }
  0x25   :  { %1155 = vmatpush3.msra.mxu0 %v49_v36  ;;  %1215 = vmatprep.subr.mxu1 %v54_v26 }
  0x26   :  { %1103 = vmatmul.mubr.msk.f32.gmra.mxu0 %vm72_vm0, %v31_v31  ;;  %1231 = vmatpush3.msra.mxu1 %v54_v26 }
  0x27   :  { %1105 = vmatprep.mubr.msk.f32.mxu0 %vm72_vm0, %v32_v33  ;;  %1216 = vmatprep.subr.mxu1 %v53_v28 }
  0x28   :  { %1232 = vmatpush3.msra.mxu1 %v53_v28  ;;  %1156 = vmatprep.subr.mxu0 %v48_v49 }
  0x29   :  { %1217 = vmatprep.subr.mxu1 %v52_v30  ;;  %1157 = vmatpush3.msra.mxu0 %v48_v49 }
  0x2a   :  { %1106 = vmatmul.mubr.msk.f32.gmra.mxu0 %vm72_vm0, %v33_v35  ;;  %1233 = vmatpush3.msra.mxu1 %v52_v30 }
  0x2b   :  { %1108 = vmatprep.mubr.msk.f32.mxu0 %vm72_vm0, %v34_v37  ;;  %1218 = vmatprep.subr.mxu1 %v51_v32 }
  0x2c   :  { %1234 = vmatpush3.msra.mxu1 %v51_v32 }
  0x2d   :  { %1219 = vmatprep.subr.mxu1 %v50_v34 }
  0x2e   :  { %1109 = vmatmul.mubr.msk.f32.gmra.mxu0 %vm72_vm0, %v35_v38  ;;  %1235 = vmatpush3.msra.mxu1 %v50_v34 }
  0x2f   :  { %1111 = vmatprep.mubr.msk.f32.mxu0 %vm72_vm0, %v36_v39  ;;  %1220 = vmatprep.subr.mxu1 %v49_v36 }
  0x30   :  { %1236 = vmatpush3.msra.mxu1 %v49_v36 }
  0x31   :  { %1221 = vmatprep.subr.mxu1 %v48_v49 }
  0x32   :  { %1112 = vmatmul.mubr.msk.f32.gmra.mxu0 %vm72_vm0, %v37_v40  ;;  %1237 = vmatpush3.msra.mxu1 %v48_v49 }
  0x33   :  { %1114 = vmatprep.mubr.msk.f32.mxu0 %vm72_vm0, %v38_v41 }
  0x36   :  { %1115 = vmatmul.mubr.msk.f32.gmra.mxu0 %vm72_vm0, %v39_v42 }
  0x37   :  { %1117 = vmatprep.mubr.msk.f32.mxu0 %vm72_vm0, %v40_v43 }
  0x3a   :  { %1118 = vmatmul.mubr.msk.f32.gmra.mxu0 %vm72_vm0, %v41_v44 }
  0x3b   :  { %1120 = vmatprep.mubr.msk.f32.mxu0 %vm72_vm0, %v42_v45 }
  0x3e   :  { %1121 = vmatmul.mubr.msk.f32.gmra.mxu0 %vm72_vm0, %v43_v46 }
  0x3f   :  { %1123 = vmatprep.mubr.msk.f32.mxu0 %vm72_vm0, %v44_v47 }
  0x42   :  { %1124 = vmatmul.mubr.msk.f32.gmra.mxu0 %vm72_vm0, %v45_v48 }
  0xc6   :  { %v1080_v51 = vpop.f32.mrf.mxu0 }
  0xc7   :  { %v241_v52 = vadd.f32 %v1080_v51, %v1443_v50 }
  0xc8   :  { %v235_v53 = vpop.f32.mrf.mxu0 }
  0xc9   :  { %v236_v54 = vadd.f32 %v1443_v50, %v235_v53  ;;  %v395_v57 = vmax.f32 %v241_v52, 0.0 }
  0xca   :  { %v1083_v55 = vpop.f32.mrf.mxu0 }
  0xcb   :  { %v394_v56 = vmax.f32 %v236_v54, 0.0  ;;  %v251_v58 = vadd.f32 %v1083_v55, %v1443_v50 }
  0xcc   :  { %v245_v59 = vpop.f32.mrf.mxu0 }
  0xcd   :  { %v246_v60 = vadd.f32 %v1443_v50, %v245_v59  ;;  %1158 = vmatprep.mubr.f32.mxu0 %v394_v56  ;;  %v397_v0 = vmax.f32 %v251_v58, 0.0 }
  0xce   :  { %1159 = vmatmul.mubr.f32.vlgmr.msra.gmra.mxu0 %v395_v57  ;;  %v1086_v61 = vpop.f32.mrf.mxu0 }
  0xcf   :  { %v396_v62 = vmax.f32 %v246_v60, 0.0  ;;  %v261_v63 = vadd.f32 %v1086_v61, %v1443_v50 }
  0xd0   :  { %v255_v1 = vpop.f32.mrf.mxu0 }
  0xd1   :  { %v256_v2 = vadd.f32 %v1443_v50, %v255_v1  ;;  %1161 = vmatprep.mubr.f32.mxu0 %v396_v62  ;;  %v399_v3 = vmax.f32 %v261_v63, 0.0 }
  0xd2   :  { %1162 = vmatmul.mubr.f32.gmra.mxu0 %v397_v0  ;;  %v1089_v4 = vpop.f32.mrf.mxu0 }
  0xd3   :  { %v398_v5 = vmax.f32 %v256_v2, 0.0  ;;  %v271_v6 = vadd.f32 %v1089_v4, %v1443_v50 }
  0xd4   :  { %v265_v7 = vpop.f32.mrf.mxu0 }
  0xd5   :  { %1164 = vmatprep.mubr.f32.mxu0 %v398_v5  ;;  %v266_v8 = vadd.f32 %v1443_v50, %v265_v7  ;;  %v401_v9 = vmax.f32 %v271_v6, 0.0 }
  0xd6   :  { %1165 = vmatmul.mubr.f32.gmra.mxu0 %v399_v3  ;;  %v1092_v10 = vpop.f32.mrf.mxu0 }
  0xd7   :  { %v400_v11 = vmax.f32 %v266_v8, 0.0  ;;  %v281_v12 = vadd.f32 %v1092_v10, %v1443_v50 }
  0xd8   :  { %v275_v13 = vpop.f32.mrf.mxu0 }
  0xd9   :  { %1167 = vmatprep.mubr.f32.mxu1 %v400_v11  ;;  %v276_v14 = vadd.f32 %v1443_v50, %v275_v13  ;;  %v403_v15 = vmax.f32 %v281_v12, 0.0 }
  0xda   :  { %1168 = vmatmul.mubr.f32.vlgmr.msra.gmra.mxu1 %v401_v9  ;;  %v1095_v16 = vpop.f32.mrf.mxu0 }
  0xdb   :  { %v402_v17 = vmax.f32 %v276_v14, 0.0  ;;  %v291_v18 = vadd.f32 %v1095_v16, %v1443_v50 }
  0xdc   :  { %v285_v19 = vpop.f32.mrf.mxu0 }
  0xdd   :  { %1170 = vmatprep.mubr.f32.mxu1 %v402_v17  ;;  %v286_v20 = vadd.f32 %v1443_v50, %v285_v19  ;;  %v405_v21 = vmax.f32 %v291_v18, 0.0 }
  0xde   :  { %1171 = vmatmul.mubr.f32.gmra.mxu1 %v403_v15  ;;  %v1098_v22 = vpop.f32.mrf.mxu0 }
  0xdf   :  { %v404_v23 = vmax.f32 %v286_v20, 0.0  ;;  %v301_v24 = vadd.f32 %v1098_v22, %v1443_v50  ;;  %v1480_v20 = vld [vmem:[%s1778_s2 + $0x1] ss:$0 sm:$0xff] }
  0xe0   :  { %v295_v25 = vpop.f32.mrf.mxu0 }
  0xe1   :  { %1173 = vmatprep.mubr.f32.mxu1 %v404_v23  ;;  %v296_v26 = vadd.f32 %v1443_v50, %v295_v25  ;;  %v407_v27 = vmax.f32 %v301_v24, 0.0  ;;  %v1486_v24 = vld [vmem:[%s1778_s2 + $0x3] ss:$0 sm:$0xff] }
  0xe2   :  { %1174 = vmatmul.mubr.f32.gmra.mxu1 %v405_v21  ;;  %v1101_v28 = vpop.f32.mrf.mxu0 }
  0xe3   :  { %v406_v29 = vmax.f32 %v296_v26, 0.0  ;;  %v311_v30 = vadd.f32 %v1101_v28, %v1443_v50 }
  0xe4   :  { %v305_v31 = vpop.f32.mrf.mxu0 }
  0xe5   :  { %1176 = vmatprep.mubr.f32.mxu1 %v406_v29  ;;  %v306_v32 = vadd.f32 %v1443_v50, %v305_v31  ;;  %v409_v33 = vmax.f32 %v311_v30, 0.0 }
  0xe6   :  { %1177 = vmatmul.mubr.f32.gmra.mxu1 %v407_v27  ;;  %v1104_v34 = vpop.f32.mrf.mxu0 }
  0xe7   :  { %v408_v35 = vmax.f32 %v306_v32, 0.0  ;;  %v321_v36 = vadd.f32 %v1104_v34, %v1443_v50 }
  0xe8   :  { %v315_v37 = vpop.f32.mrf.mxu0 }
  0xe9   :  { %1179 = vmatprep.mubr.f32.mxu1 %v408_v35  ;;  %v316_v38 = vadd.f32 %v1443_v50, %v315_v37  ;;  %v411_v39 = vmax.f32 %v321_v36, 0.0 }
  0xea   :  { %1180 = vmatmul.mubr.f32.gmra.mxu1 %v409_v33  ;;  %v1107_v40 = vpop.f32.mrf.mxu0 }
  0xeb   :  { %v410_v41 = vmax.f32 %v316_v38, 0.0  ;;  %v331_v42 = vadd.f32 %v1107_v40, %v1443_v50 }
  0xec   :  { %v325_v43 = vpop.f32.mrf.mxu0 }
  0xed   :  { %1182 = vmatprep.mubr.f32.mxu1 %v410_v41  ;;  %v326_v44 = vadd.f32 %v1443_v50, %v325_v43  ;;  %v413_v45 = vmax.f32 %v331_v42, 0.0 }
  0xee   :  { %1183 = vmatmul.mubr.f32.gmra.mxu1 %v411_v39  ;;  %v1110_v46 = vpop.f32.mrf.mxu0 }
  0xef   :  { %v412_v47 = vmax.f32 %v326_v44, 0.0  ;;  %v341_v48 = vadd.f32 %v1110_v46, %v1443_v50 }
  0xf0   :  { %v335_v49 = vpop.f32.mrf.mxu0 }
  0xf1   :  { %1185 = vmatprep.mubr.f32.mxu1 %v412_v47  ;;  %v336_v51 = vadd.f32 %v1443_v50, %v335_v49  ;;  %v415_v52 = vmax.f32 %v341_v48, 0.0 }
  0xf2   :  { %1186 = vmatmul.mubr.f32.gmra.mxu1 %v413_v45  ;;  %v1113_v53 = vpop.f32.mrf.mxu0 }
  0xf3   :  { %v414_v54 = vmax.f32 %v336_v51, 0.0  ;;  %v351_v55 = vadd.f32 %v1113_v53, %v1443_v50 }
  0xf4   :  { %v345_v56 = vpop.f32.mrf.mxu0 }
  0xf5   :  { %1188 = vmatprep.mubr.f32.mxu1 %v414_v54  ;;  %v346_v57 = vadd.f32 %v1443_v50, %v345_v56  ;;  %v417_v58 = vmax.f32 %v351_v55, 0.0 }
  0xf6   :  { %1189 = vmatmul.mubr.f32.gmra.mxu1 %v415_v52  ;;  %v1116_v59 = vpop.f32.mrf.mxu0 }
  0xf7   :  { %v416_v60 = vmax.f32 %v346_v57, 0.0  ;;  %v361_v61 = vadd.f32 %v1116_v59, %v1443_v50 }
  0xf8   :  { %v355_v62 = vpop.f32.mrf.mxu0 }
  0xf9   :  { %1191 = vmatprep.mubr.f32.mxu1 %v416_v60  ;;  %v356_v63 = vadd.f32 %v1443_v50, %v355_v62  ;;  %v419_v0 = vmax.f32 %v361_v61, 0.0 }
  0xfa   :  { %1192 = vmatmul.mubr.f32.gmra.mxu1 %v417_v58  ;;  %v1119_v1 = vpop.f32.mrf.mxu0 }
  0xfb   :  { %v418_v2 = vmax.f32 %v356_v63, 0.0  ;;  %v371_v3 = vadd.f32 %v1119_v1, %v1443_v50 }
  0xfc   :  { %v365_v4 = vpop.f32.mrf.mxu0 }
  0xfd   :  { %1194 = vmatprep.mubr.f32.mxu1 %v418_v2  ;;  %v366_v5 = vadd.f32 %v1443_v50, %v365_v4  ;;  %v421_v6 = vmax.f32 %v371_v3, 0.0 }
  0xfe   :  { %1195 = vmatmul.mubr.f32.gmra.mxu1 %v419_v0  ;;  %v1122_v7 = vpop.f32.mrf.mxu0 }
  0xff   :  { %v420_v8 = vmax.f32 %v366_v5, 0.0  ;;  %v381_v9 = vadd.f32 %v1122_v7, %v1443_v50 }
 0x100   :  { %v375_v10 = vpop.f32.mrf.mxu0 }
 0x101   :  { %1197 = vmatprep.mubr.f32.mxu1 %v420_v8  ;;  %v376_v11 = vadd.f32 %v1443_v50, %v375_v10  ;;  %v423_v12 = vmax.f32 %v381_v9, 0.0 }
 0x102   :  { %1198 = vmatmul.mubr.f32.gmra.mxu1 %v421_v6  ;;  %v1125_v13 = vpop.f32.mrf.mxu0 }
 0x103   :  { %v422_v14 = vmax.f32 %v376_v11, 0.0  ;;  %v391_v15 = vadd.f32 %v1125_v13, %v1443_v50 }
 0x104   :  { %v385_v16 = vpop.f32.mrf.mxu0 }
 0x105   :  { %1200 = vmatprep.mubr.f32.mxu1 %v422_v14  ;;  %v386_v17 = vadd.f32 %v1443_v50, %v385_v16  ;;  %v425_v18 = vmax.f32 %v391_v15, 0.0  ;;  %v1491_v50 = vld [vmem:[%s1778_s2 + $0x2] ss:$0 sm:$0xff] }
 0x106   :  { %1201 = vmatmul.mubr.f32.gmra.mxu1 %v423_v12 }
 0x107   :  { %v424_v19 = vmax.f32 %v386_v17, 0.0 }
 0x109   :  { %1203 = vmatprep.mubr.f32.mxu1 %v424_v19 }
 0x10a   :  { %1204 = vmatmul.mubr.f32.gmra.mxu1 %v425_v18 }
 0x18e   :  { %v1160_v21 = vpop.f32.mrf.mxu0 }
 0x18f   :  { %v502_v22 = vadd.f32 %v1160_v21, %v1480_v20 }
 0x190   :  { %v496_v23 = vpop.f32.mrf.mxu0 }
 0x191   :  { %v656_v25 = vmax.f32 %v502_v22, 0.0  ;;  %v497_v26 = vadd.f32 %v1480_v20, %v496_v23 }
 0x192   :  { %v1163_v27 = vpop.f32.mrf.mxu0 }
 0x193   :  { %v655_v28 = vmax.f32 %v497_v26, 0.0  ;;  %v512_v29 = vadd.f32 %v1163_v27, %v1480_v20  ;;  %v792_v30 = vmul.f32 %v1486_v24, %v656_v25  ;;  %v692_v31 = vmul.f32 %v1491_v50, %v656_v25 }
 0x194   :  { %v506_v32 = vpop.f32.mrf.mxu0 }
 0x195   :  { %v658_v33 = vmax.f32 %v512_v29, 0.0  ;;  %825 = vadd.xlane.f32.xlu1 %v792_v30  ;;  %725 = vadd.xlane.f32.xlu0 %v692_v31  ;;  %v507_v35 = vadd.f32 %v1480_v20, %v506_v32  ;;  %v691_v37 = vmul.f32 %v1491_v50, %v655_v28  ;;  %v791_v39 = vmul.f32 %v1486_v24, %v655_v28 }
 0x196   :  { %v1166_v34 = vpop.f32.mrf.mxu0 }
 0x197   :  { %v694_v36 = vmul.f32 %v1491_v50, %v658_v33  ;;  %v657_v41 = vmax.f32 %v507_v35, 0.0  ;;  %v522_v42 = vadd.f32 %v1166_v34, %v1480_v20  ;;  %v794_v44 = vmul.f32 %v1486_v24, %v658_v33 }
 0x198   :  { %v516_v38 = vpop.f32.mrf.mxu0 }
 0x199   :  { %729 = vadd.xlane.f32.xlu1 %v694_v36  ;;  %723 = vadd.xlane.f32.xlu0 %v691_v37  ;;  %v517_v43 = vadd.f32 %v1480_v20, %v516_v38  ;;  %v660_v47 = vmax.f32 %v522_v42, 0.0  ;;  %v693_v49 = vmul.f32 %v1491_v50, %v657_v41  ;;  %v793_v51 = vmul.f32 %v1486_v24, %v657_v41 }
 0x19a   :  { %v1169_v40 = vpop.f32.mrf.mxu1 }
 0x19b   :  { %v659_v48 = vmax.f32 %v517_v43, 0.0  ;;  %v532_v54 = vadd.f32 %v1169_v40, %v1480_v20  ;;  %v696_v56 = vmul.f32 %v1491_v50, %v660_v47  ;;  %v796_v62 = vmul.f32 %v1486_v24, %v660_v47 }
 0x19c   :  { %v526_v45 = vpop.f32.mrf.mxu1 }
 0x19d   :  { %829 = vadd.xlane.f32.xlu1 %v794_v44  ;;  %823 = vadd.xlane.f32.xlu0 %v791_v39  ;;  %v527_v55 = vadd.f32 %v1480_v20, %v526_v45  ;;  %v695_v57 = vmul.f32 %v1491_v50, %v659_v48  ;;  %v662_v60 = vmax.f32 %v532_v54, 0.0  ;;  %v795_v63 = vmul.f32 %v1486_v24, %v659_v48 }
 0x19e   :  { %v1172_v46 = vpop.f32.mrf.mxu1 }
 0x19f   :  { %v661_v61 = vmax.f32 %v527_v55, 0.0  ;;  %v542_v1 = vadd.f32 %v1172_v46, %v1480_v20  ;;  %v698_v4 = vmul.f32 %v1491_v50, %v662_v60  ;;  %v798_v10 = vmul.f32 %v1486_v24, %v662_v60 }
 0x1a0   :  { %v536_v52 = vpop.f32.mrf.mxu1 }
 0x1a1   :  { %727 = vadd.xlane.f32.xlu1 %v693_v49  ;;  %827 = vadd.xlane.f32.xlu0 %v793_v51  ;;  %v537_v2 = vadd.f32 %v1480_v20, %v536_v52  ;;  %v697_v5 = vmul.f32 %v1491_v50, %v661_v61  ;;  %v664_v7 = vmax.f32 %v542_v1, 0.0  ;;  %v797_v11 = vmul.f32 %v1486_v24, %v661_v61 }
 0x1a2   :  { %v1175_v53 = vpop.f32.mrf.mxu1 }
 0x1a3   :  { %v663_v8 = vmax.f32 %v537_v2, 0.0  ;;  %v552_v16 = vadd.f32 %v1175_v53, %v1480_v20  ;;  %v700_v18 = vmul.f32 %v1491_v50, %v664_v7  ;;  %v800_v34 = vmul.f32 %v1486_v24, %v664_v7 }
 0x1a4   :  { %v546_v58 = vpop.f32.mrf.mxu1 }
 0x1a5   :  { %733 = vadd.xlane.f32.xlu1 %v696_v56  ;;  %731 = vadd.xlane.f32.xlu0 %v695_v57  ;;  %v547_v17 = vadd.f32 %v1480_v20, %v546_v58  ;;  %v699_v19 = vmul.f32 %v1491_v50, %v663_v8  ;;  %v666_v32 = vmax.f32 %v552_v16, 0.0  ;;  %v799_v35 = vmul.f32 %v1486_v24, %v663_v8 }
 0x1a6   :  { %v1178_v59 = vpop.f32.mrf.mxu1 }
 0x1a7   :  { %v665_v33 = vmax.f32 %v547_v17, 0.0  ;;  %v562_v46 = vadd.f32 %v1178_v59, %v1480_v20  ;;  %v702_v48 = vmul.f32 %v1491_v50, %v666_v32 }
 0x1a8   :  { %v556_v0 = vpop.f32.mrf.mxu1 }
 0x1a9   :  { %833 = vadd.xlane.f32.xlu1 %v796_v62  ;;  %831 = vadd.xlane.f32.xlu0 %v795_v63  ;;  %v557_v47 = vadd.f32 %v1480_v20, %v556_v0  ;;  %v701_v49 = vmul.f32 %v1491_v50, %v665_v33  ;;  %v668_v61 = vmax.f32 %v562_v46, 0.0  ;;  %v802_v63 = vmul.f32 %v1486_v24, %v666_v32 }
 0x1aa   :  { %v1514_v3 = vpop.f32.mrf.mxu1  ;;  %v801_v0 = vmul.f32 %v1486_v24, %v665_v33 }
 0x1ab   :  { %v667_v62 = vmax.f32 %v557_v47, 0.0  ;;  %v804_v33 = vmul.f32 %v1486_v24, %v668_v61 }
 0x1ac   :  { %v1518_v6 = vpop.f32.mrf.mxu1 }
 0x1ad   :  { %737 = vadd.xlane.f32.xlu1 %v698_v4  ;;  %735 = vadd.xlane.f32.xlu0 %v697_v5  ;;  %v703_v16 = vmul.f32 %v1491_v50, %v667_v62 }
 0x1ae   :  { %v1184_v9 = vpop.f32.mrf.mxu1 }
 0x1af   :  { %v582_v12 = vadd.f32 %v1184_v9, %v1480_v20 }
 0x1b0   :  { %v576_v13 = vpop.f32.mrf.mxu1 }
 0x1b1   :  { %837 = vadd.xlane.f32.xlu1 %v798_v10  ;;  %835 = vadd.xlane.f32.xlu0 %v797_v11  ;;  %v672_v14 = vmax.f32 %v582_v12, 0.0  ;;  %v577_v15 = vadd.f32 %v1480_v20, %v576_v13  ;;  %v572_v13 = vadd.f32 %v1514_v3, %v1480_v20 }
 0x1b2   :  { %v1187_v21 = vpop.f32.mrf.mxu1 }
 0x1b3   :  { %v671_v22 = vmax.f32 %v577_v15, 0.0  ;;  %v592_v23 = vadd.f32 %v1187_v21, %v1480_v20  ;;  %v1530_v25 = vmul.f32 %v1491_v50, %v672_v14  ;;  %v1533_v26 = vmul.f32 %v1486_v24, %v672_v14 }
 0x1b4   :  { %v586_v27 = vpop.f32.mrf.mxu1  ;;  %v567_v14 = vadd.f32 %v1480_v20, %v1518_v6  ;;  %v704_v15 = vmul.f32 %v1491_v50, %v668_v61 }
 0x1b5   :  { %741 = vadd.xlane.f32.xlu1 %v700_v18  ;;  %739 = vadd.xlane.f32.xlu0 %v699_v19  ;;  %v674_v28 = vmax.f32 %v592_v23, 0.0  ;;  %v587_v29 = vadd.f32 %v1480_v20, %v586_v27  ;;  %v1537_v30 = vmul.f32 %v1491_v50, %v671_v22  ;;  %v1540_v31 = vmul.f32 %v1486_v24, %v671_v22 }
 0x1b6   :  { %v1190_v36 = vpop.f32.mrf.mxu1  ;;  %v669_v32 = vmax.f32 %v567_v14, 0.0 }
 0x1b7   :  { %v673_v37 = vmax.f32 %v587_v29, 0.0  ;;  %v602_v38 = vadd.f32 %v1190_v36, %v1480_v20  ;;  %v1546_v39 = vmul.f32 %v1491_v50, %v674_v28  ;;  %v1549_v40 = vmul.f32 %v1486_v24, %v674_v28 }
 0x1b8   :  { %v596_v41 = vpop.f32.mrf.mxu1  ;;  %v670_v29 = vmax.f32 %v572_v13, 0.0 }
 0x1b9   :  { %841 = vadd.xlane.f32.xlu1 %v800_v34  ;;  %839 = vadd.xlane.f32.xlu0 %v799_v35  ;;  %v676_v42 = vmax.f32 %v602_v38, 0.0  ;;  %v597_v43 = vadd.f32 %v1480_v20, %v596_v41  ;;  %v1553_v44 = vmul.f32 %v1491_v50, %v673_v37  ;;  %v1556_v45 = vmul.f32 %v1486_v24, %v673_v37 }
 0x1ba   :  { %v1193_v51 = vpop.f32.mrf.mxu1  ;;  %v803_v34 = vmul.f32 %v1486_v24, %v667_v62 }
 0x1bb   :  { %v675_v52 = vmax.f32 %v597_v43, 0.0  ;;  %v612_v53 = vadd.f32 %v1193_v51, %v1480_v20  ;;  %v1564_v54 = vmul.f32 %v1491_v50, %v676_v42  ;;  %v1567_v55 = vmul.f32 %v1486_v24, %v676_v42 }
 0x1bc   :  { %v606_v56 = vpop.f32.mrf.mxu1  ;;  %v705_v51 = vmul.f32 %v1491_v50, %v669_v32 }
 0x1bd   :  { %745 = vadd.xlane.f32.xlu1 %v702_v48  ;;  %743 = vadd.xlane.f32.xlu0 %v701_v49  ;;  %v678_v57 = vmax.f32 %v612_v53, 0.0  ;;  %v607_v58 = vadd.f32 %v1480_v20, %v606_v56  ;;  %v1571_v59 = vmul.f32 %v1491_v50, %v675_v52  ;;  %v1574_v60 = vmul.f32 %v1486_v24, %v675_v52 }
 0x1be   :  { %v1196_v1 = vpop.f32.mrf.mxu1  ;;  %v706_v49 = vmul.f32 %v1491_v50, %v670_v29 }
 0x1bf   :  { %v677_v2 = vmax.f32 %v607_v58, 0.0  ;;  %v622_v4 = vadd.f32 %v1196_v1, %v1480_v20  ;;  %v1580_v5 = vmul.f32 %v1491_v50, %v678_v57  ;;  %v1583_v7 = vmul.f32 %v1486_v24, %v678_v57 }
 0x1c0   :  { %v616_v8 = vpop.f32.mrf.mxu1 }
 0x1c1   :  { %845 = vadd.xlane.f32.xlu1 %v802_v63  ;;  %843 = vadd.xlane.f32.xlu0 %v801_v0  ;;  %v680_v9 = vmax.f32 %v622_v4, 0.0  ;;  %v617_v10 = vadd.f32 %v1480_v20, %v616_v8  ;;  %v1587_v11 = vmul.f32 %v1491_v50, %v677_v2  ;;  %v1590_v12 = vmul.f32 %v1486_v24, %v677_v2 }
 0x1c2   :  { %v1199_v17 = vpop.f32.mrf.mxu1  ;;  %v806_v2 = vmul.f32 %v1486_v24, %v670_v29  ;;  %v805_v4 = vmul.f32 %v1486_v24, %v669_v32 }
 0x1c3   :  { %v679_v18 = vmax.f32 %v617_v10, 0.0  ;;  %v632_v19 = vadd.f32 %v1199_v17, %v1480_v20  ;;  %v1600_v21 = vmul.f32 %v1491_v50, %v680_v9  ;;  %v1603_v22 = vmul.f32 %v1486_v24, %v680_v9 }
 0x1c4   :  { %v626_v23 = vpop.f32.mrf.mxu1 }
 0x1c5   :  { %749 = vadd.xlane.f32.xlu1 %v704_v15  ;;  %747 = vadd.xlane.f32.xlu0 %v703_v16  ;;  %v682_v3 = vmax.f32 %v632_v19, 0.0  ;;  %v627_v6 = vadd.f32 %v1480_v20, %v626_v23  ;;  %v715_v27 = vmul.f32 %v1491_v50, %v679_v18  ;;  %v815_v28 = vmul.f32 %v1486_v24, %v679_v18 }
 0x1c6   :  { %v1202_v35 = vpop.f32.mrf.mxu1 }
 0x1c7   :  { %v681_v36 = vmax.f32 %v627_v6, 0.0  ;;  %v642_v37 = vadd.f32 %v1202_v35, %v1480_v20  ;;  %v718_v38 = vmul.f32 %v1491_v50, %v682_v3  ;;  %v818_v41 = vmul.f32 %v1486_v24, %v682_v3 }
 0x1c8   :  { %v636_v42 = vpop.f32.mrf.mxu1 }
 0x1c9   :  { %849 = vadd.xlane.f32.xlu1 %v804_v33  ;;  %847 = vadd.xlane.f32.xlu0 %v803_v34  ;;  %v684_v43 = vmax.f32 %v642_v37, 0.0  ;;  %v637_v46 = vadd.f32 %v1480_v20, %v636_v42  ;;  %v717_v47 = vmul.f32 %v1491_v50, %v681_v36  ;;  %v817_v48 = vmul.f32 %v1486_v24, %v681_v36 }
 0x1ca   :  { %v1205_v52 = vpop.f32.mrf.mxu1 }
 0x1cb   :  { %v683_v53 = vmax.f32 %v637_v46, 0.0  ;;  %v652_v56 = vadd.f32 %v1205_v52, %v1480_v20  ;;  %v720_v57 = vmul.f32 %v1491_v50, %v684_v43  ;;  %v820_v58 = vmul.f32 %v1486_v24, %v684_v43 }
 0x1cc   :  { %v646_v61 = vpop.f32.mrf.mxu1 }
 0x1cd   :  { %753 = vadd.xlane.f32.xlu1 %v706_v49  ;;  %751 = vadd.xlane.f32.xlu0 %v705_v51  ;;  %v686_v62 = vmax.f32 %v652_v56, 0.0  ;;  %v647_v63 = vadd.f32 %v1480_v20, %v646_v61  ;;  %v719_v0 = vmul.f32 %v1491_v50, %v683_v53  ;;  %v819_v1 = vmul.f32 %v1486_v24, %v683_v53 }
 0x1cf   :  { %v685_v8 = vmax.f32 %v647_v63, 0.0  ;;  %v722_v9 = vmul.f32 %v1491_v50, %v686_v62  ;;  %v822_v10 = vmul.f32 %v1486_v24, %v686_v62 }
 0x1d1   :  { %853 = vadd.xlane.f32.xlu1 %v806_v2  ;;  %851 = vadd.xlane.f32.xlu0 %v805_v4  ;;  %v721_v13 = vmul.f32 %v1491_v50, %v685_v8  ;;  %v821_v14 = vmul.f32 %v1486_v24, %v685_v8 }
 0x1d5   :  { %757 = vadd.xlane.f32.xlu1 %v1530_v25  ;;  %755 = vadd.xlane.f32.xlu0 %v1537_v30 }
 0x1d9   :  { %857 = vadd.xlane.f32.xlu1 %v1533_v26  ;;  %855 = vadd.xlane.f32.xlu0 %v1540_v31 }
 0x1dd   :  { %761 = vadd.xlane.f32.xlu1 %v1546_v39  ;;  %759 = vadd.xlane.f32.xlu0 %v1553_v44 }
 0x1e1   :  { %861 = vadd.xlane.f32.xlu1 %v1549_v40  ;;  %859 = vadd.xlane.f32.xlu0 %v1556_v45 }
 0x1e5   :  { %765 = vadd.xlane.f32.xlu1 %v1564_v54  ;;  %763 = vadd.xlane.f32.xlu0 %v1571_v59 }
 0x1e9   :  { %865 = vadd.xlane.f32.xlu1 %v1567_v55  ;;  %863 = vadd.xlane.f32.xlu0 %v1574_v60 }
 0x1ed   :  { %769 = vadd.xlane.f32.xlu1 %v1580_v5  ;;  %767 = vadd.xlane.f32.xlu0 %v1587_v11 }
 0x1f1   :  { %869 = vadd.xlane.f32.xlu1 %v1583_v7  ;;  %867 = vadd.xlane.f32.xlu0 %v1590_v12 }
 0x1f5   :  { %773 = vadd.xlane.f32.xlu1 %v1600_v21  ;;  %771 = vadd.xlane.f32.xlu0 %v715_v27 }
 0x1f9   :  { %873 = vadd.xlane.f32.xlu1 %v1603_v22  ;;  %871 = vadd.xlane.f32.xlu0 %v815_v28 }
 0x1fd   :  { %777 = vadd.xlane.f32.xlu1 %v718_v38  ;;  %775 = vadd.xlane.f32.xlu0 %v717_v47 }
 0x201   :  { %877 = vadd.xlane.f32.xlu1 %v818_v41  ;;  %875 = vadd.xlane.f32.xlu0 %v817_v48 }
 0x205   :  { %781 = vadd.xlane.f32.xlu1 %v720_v57  ;;  %779 = vadd.xlane.f32.xlu0 %v719_v0 }
 0x209   :  { %881 = vadd.xlane.f32.xlu1 %v820_v58  ;;  %879 = vadd.xlane.f32.xlu0 %v819_v1 }
 0x20d   :  { %785 = vadd.xlane.f32.xlu1 %v722_v9  ;;  %783 = vadd.xlane.f32.xlu0 %v721_v13 }
 0x211   :  { %885 = vadd.xlane.f32.xlu1 %v822_v10  ;;  %883 = vadd.xlane.f32.xlu0 %v821_v14 }
 0x21e   :  { %v826_v20 = vpop.xlane.xlu1 %825  ;;  %v726_v24 = vpop.xlane.xlu0 %725 }
 0x21f   :  { %v888_v50 = vmin.f32 %v726_v24, %v826_v20 }
 0x221   :  { %921 = vst.msk [vmem:[%s1779_s3 + $0x8] sm:$0xff] %vm919_vm1, %v888_v50 }
 0x222   :  { %v730_v25 = vpop.xlane.xlu1 %729  ;;  %v724_v26 = vpop.xlane.xlu0 %723 }
 0x226   :  { %v830_v30 = vpop.xlane.xlu1 %829  ;;  %v824_v31 = vpop.xlane.xlu0 %823 }
 0x227   :  { %v890_v39 = vmin.f32 %v730_v25, %v830_v30  ;;  %v887_v40 = vmin.f32 %v724_v26, %v824_v31 }
 0x229   :  { %923 = vst.msk [vmem:[%s1779_s3 + $0x18] sm:$0xff] %vm919_vm1, %v890_v39  ;;  %920 = vst.msk [vmem:[%s1779_s3] sm:$0xff] %vm919_vm1, %v887_v40 }
 0x22a   :  { %v728_v44 = vpop.xlane.xlu1 %727  ;;  %v828_v45 = vpop.xlane.xlu0 %827 }
 0x22b   :  { %v889_v54 = vmin.f32 %v728_v44, %v828_v45 }
 0x22d   :  { %922 = vst.msk [vmem:[%s1779_s3 + $0x10] sm:$0xff] %vm919_vm1, %v889_v54 }
 0x22e   :  { %v734_v55 = vpop.xlane.xlu1 %733  ;;  %v732_v59 = vpop.xlane.xlu0 %731 }
 0x232   :  { %v834_v60 = vpop.xlane.xlu1 %833  ;;  %v832_v5 = vpop.xlane.xlu0 %831 }
 0x233   :  { %v892_v7 = vmin.f32 %v734_v55, %v834_v60  ;;  %v891_v11 = vmin.f32 %v732_v59, %v832_v5 }
 0x235   :  { %925 = vst.msk [vmem:[%s1779_s3 + $0x28] sm:$0xff] %vm919_vm1, %v892_v7  ;;  %924 = vst.msk [vmem:[%s1779_s3 + $0x20] sm:$0xff] %vm919_vm1, %v891_v11 }
 0x236   :  { %v738_v12 = vpop.xlane.xlu1 %737  ;;  %v736_v15 = vpop.xlane.xlu0 %735 }
 0x23a   :  { %v838_v16 = vpop.xlane.xlu1 %837  ;;  %v836_v17 = vpop.xlane.xlu0 %835 }
 0x23b   :  { %v894_v18 = vmin.f32 %v738_v12, %v838_v16  ;;  %v893_v19 = vmin.f32 %v736_v15, %v836_v17 }
 0x23d   :  { %927 = vst.msk [vmem:[%s1779_s3 + $0x38] sm:$0xff] %vm919_vm1, %v894_v18  ;;  %926 = vst.msk [vmem:[%s1779_s3 + $0x30] sm:$0xff] %vm919_vm1, %v893_v19 }
 0x23e   :  { %v742_v21 = vpop.xlane.xlu1 %741  ;;  %v740_v22 = vpop.xlane.xlu0 %739 }
 0x242   :  { %v842_v23 = vpop.xlane.xlu1 %841  ;;  %v840_v3 = vpop.xlane.xlu0 %839 }
 0x243   :  { %v896_v6 = vmin.f32 %v742_v21, %v842_v23  ;;  %v895_v27 = vmin.f32 %v740_v22, %v840_v3 }
 0x245   :  { %929 = vst.msk [vmem:[%s1779_s3 + $0x48] sm:$0xff] %vm919_vm1, %v896_v6  ;;  %928 = vst.msk [vmem:[%s1779_s3 + $0x40] sm:$0xff] %vm919_vm1, %v895_v27 }
 0x246   :  { %v746_v28 = vpop.xlane.xlu1 %745  ;;  %v744_v29 = vpop.xlane.xlu0 %743 }
 0x24a   :  { %v846_v32 = vpop.xlane.xlu1 %845  ;;  %v844_v33 = vpop.xlane.xlu0 %843 }
 0x24b   :  { %v898_v34 = vmin.f32 %v746_v28, %v846_v32  ;;  %v897_v35 = vmin.f32 %v744_v29, %v844_v33 }
 0x24d   :  { %931 = vst.msk [vmem:[%s1779_s3 + $0x58] sm:$0xff] %vm919_vm1, %v898_v34  ;;  %930 = vst.msk [vmem:[%s1779_s3 + $0x50] sm:$0xff] %vm919_vm1, %v897_v35 }
 0x24e   :  { %v750_v36 = vpop.xlane.xlu1 %749  ;;  %v748_v37 = vpop.xlane.xlu0 %747 }
 0x252   :  { %v850_v38 = vpop.xlane.xlu1 %849  ;;  %v848_v41 = vpop.xlane.xlu0 %847 }
 0x253   :  { %v900_v42 = vmin.f32 %v750_v36, %v850_v38  ;;  %v899_v43 = vmin.f32 %v748_v37, %v848_v41 }
 0x255   :  { %933 = vst.msk [vmem:[%s1779_s3 + $0x68] sm:$0xff] %vm919_vm1, %v900_v42  ;;  %932 = vst.msk [vmem:[%s1779_s3 + $0x60] sm:$0xff] %vm919_vm1, %v899_v43 }
 0x256   :  { %v754_v46 = vpop.xlane.xlu1 %753  ;;  %v752_v47 = vpop.xlane.xlu0 %751 }
 0x25a   :  { %v854_v48 = vpop.xlane.xlu1 %853  ;;  %v852_v49 = vpop.xlane.xlu0 %851 }
 0x25b   :  { %v902_v51 = vmin.f32 %v754_v46, %v854_v48  ;;  %v901_v52 = vmin.f32 %v752_v47, %v852_v49 }
 0x25d   :  { %935 = vst.msk [vmem:[%s1779_s3 + $0x78] sm:$0xff] %vm919_vm1, %v902_v51  ;;  %934 = vst.msk [vmem:[%s1779_s3 + $0x70] sm:$0xff] %vm919_vm1, %v901_v52 }
 0x25e   :  { %v758_v53 = vpop.xlane.xlu1 %757  ;;  %v756_v56 = vpop.xlane.xlu0 %755 }
 0x262   :  { %v858_v57 = vpop.xlane.xlu1 %857  ;;  %v856_v58 = vpop.xlane.xlu0 %855 }
 0x263   :  { %v904_v61 = vmin.f32 %v758_v53, %v858_v57  ;;  %v903_v62 = vmin.f32 %v756_v56, %v856_v58 }
 0x265   :  { %937 = vst.msk [vmem:[%s1779_s3 + $0x88] sm:$0xff] %vm919_vm1, %v904_v61  ;;  %936 = vst.msk [vmem:[%s1779_s3 + $0x80] sm:$0xff] %vm919_vm1, %v903_v62 }
 0x266   :  { %v762_v63 = vpop.xlane.xlu1 %761  ;;  %v760_v0 = vpop.xlane.xlu0 %759 }
 0x26a   :  { %v862_v1 = vpop.xlane.xlu1 %861  ;;  %v860_v2 = vpop.xlane.xlu0 %859 }
 0x26b   :  { %v906_v4 = vmin.f32 %v762_v63, %v862_v1  ;;  %v905_v8 = vmin.f32 %v760_v0, %v860_v2 }
 0x26d   :  { %939 = vst.msk [vmem:[%s1779_s3 + $0x98] sm:$0xff] %vm919_vm1, %v906_v4  ;;  %938 = vst.msk [vmem:[%s1779_s3 + $0x90] sm:$0xff] %vm919_vm1, %v905_v8 }
 0x26e   :  { %v766_v9 = vpop.xlane.xlu1 %765  ;;  %v764_v10 = vpop.xlane.xlu0 %763 }
 0x272   :  { %v866_v13 = vpop.xlane.xlu1 %865  ;;  %v864_v14 = vpop.xlane.xlu0 %863 }
 0x273   :  { %v908_v20 = vmin.f32 %v766_v9, %v866_v13  ;;  %v907_v24 = vmin.f32 %v764_v10, %v864_v14 }
 0x275   :  { %941 = vst.msk [vmem:[%s1779_s3 + $0xa8] sm:$0xff] %vm919_vm1, %v908_v20  ;;  %940 = vst.msk [vmem:[%s1779_s3 + $0xa0] sm:$0xff] %vm919_vm1, %v907_v24 }
 0x276   :  { %v770_v50 = vpop.xlane.xlu1 %769  ;;  %v768_v25 = vpop.xlane.xlu0 %767 }
 0x27a   :  { %v870_v26 = vpop.xlane.xlu1 %869  ;;  %v868_v30 = vpop.xlane.xlu0 %867 }
 0x27b   :  { %v910_v31 = vmin.f32 %v770_v50, %v870_v26  ;;  %v909_v39 = vmin.f32 %v768_v25, %v868_v30 }
 0x27d   :  { %943 = vst.msk [vmem:[%s1779_s3 + $0xb8] sm:$0xff] %vm919_vm1, %v910_v31  ;;  %942 = vst.msk [vmem:[%s1779_s3 + $0xb0] sm:$0xff] %vm919_vm1, %v909_v39 }
 0x27e   :  { %v774_v40 = vpop.xlane.xlu1 %773  ;;  %v772_v44 = vpop.xlane.xlu0 %771 }
 0x282   :  { %v874_v45 = vpop.xlane.xlu1 %873  ;;  %v872_v54 = vpop.xlane.xlu0 %871 }
 0x283   :  { %v912_v55 = vmin.f32 %v774_v40, %v874_v45  ;;  %v911_v59 = vmin.f32 %v772_v44, %v872_v54 }
 0x285   :  { %945 = vst.msk [vmem:[%s1779_s3 + $0xc8] sm:$0xff] %vm919_vm1, %v912_v55  ;;  %944 = vst.msk [vmem:[%s1779_s3 + $0xc0] sm:$0xff] %vm919_vm1, %v911_v59 }
 0x286   :  { %v778_v60 = vpop.xlane.xlu1 %777  ;;  %v776_v5 = vpop.xlane.xlu0 %775 }
 0x28a   :  { %v878_v7 = vpop.xlane.xlu1 %877  ;;  %v876_v11 = vpop.xlane.xlu0 %875 }
 0x28b   :  { %v914_v12 = vmin.f32 %v778_v60, %v878_v7  ;;  %v913_v15 = vmin.f32 %v776_v5, %v876_v11 }
 0x28d   :  { %947 = vst.msk [vmem:[%s1779_s3 + $0xd8] sm:$0xff] %vm919_vm1, %v914_v12  ;;  %946 = vst.msk [vmem:[%s1779_s3 + $0xd0] sm:$0xff] %vm919_vm1, %v913_v15 }
 0x28e   :  { %v782_v16 = vpop.xlane.xlu1 %781  ;;  %v780_v17 = vpop.xlane.xlu0 %779 }
 0x292   :  { %v882_v18 = vpop.xlane.xlu1 %881  ;;  %v880_v19 = vpop.xlane.xlu0 %879 }
 0x293   :  { %v916_v21 = vmin.f32 %v782_v16, %v882_v18  ;;  %v915_v22 = vmin.f32 %v780_v17, %v880_v19 }
 0x295   :  { %949 = vst.msk [vmem:[%s1779_s3 + $0xe8] sm:$0xff] %vm919_vm1, %v916_v21  ;;  %948 = vst.msk [vmem:[%s1779_s3 + $0xe0] sm:$0xff] %vm919_vm1, %v915_v22 }
 0x296   :  { %v786_v23 = vpop.xlane.xlu1 %785  ;;  %v784_v3 = vpop.xlane.xlu0 %783 }
 0x29a   :  { %v886_v6 = vpop.xlane.xlu1 %885  ;;  %v884_v27 = vpop.xlane.xlu0 %883 }
 0x29b   :  { %v918_v28 = vmin.f32 %v786_v23, %v886_v6  ;;  %v917_v29 = vmin.f32 %v784_v3, %v884_v27 }
 0x29d   :  { %951 = vst.msk [vmem:[%s1779_s3 + $0xf8] sm:$0xff] %vm919_vm1, %v918_v28  ;;  %950 = vst.msk [vmem:[%s1779_s3 + $0xf0] sm:$0xff] %vm919_vm1, %v917_v29 }

</bundles_post_ra>
